<compile_context>
chip_gen: v7x
topology: tpu7x:2x2x1
jax: 0.10.0
libtpu: 0.0.40
codegen_flags: <defaults>
</compile_context>

<pallas_src>
import functools

import jax
import jax.numpy as jnp
from jax.experimental import pallas as pl
from jax.experimental.pallas import tpu as pltpu


def _round_up(x, m):
    return ((x + m - 1) // m) * m


def _focal_loss_kernel(x_ref, side_ref, out_ref, acc_ref, *,
                       gamma: float, n_rows: int, tiles_per_split: int):
    """One (TM, C) tile -> scalar partial sum, accumulated in acc_ref.

    x_ref:    (TM, C) logits (f32 or bf16; upcast to f32 here)
    side_ref: (TM, 2) int32 -- col 0 = target class id, col 1 = bitcast f32 alpha
    out_ref:  (1, 1, 1) f32 partial sum for this split (written on last step)
    acc_ref:  (1, 1) f32 VMEM scratch, resident across the reduction axis
    """
    s = pl.program_id(0)          # split axis (megacore-parallel on v7x)
    i = pl.program_id(1)          # reduction axis over row tiles

    @pl.when(i == 0)
    def _():
        acc_ref[...] = jnp.zeros_like(acc_ref)

    x = x_ref[...].astype(jnp.float32)                        # (TM, C)
    tm, ncls = x.shape

    tgt = side_ref[:, 0:1]                                    # (TM, 1) i32
    alpha = pltpu.bitcast(side_ref[:, 1:2], jnp.float32)      # (TM, 1) f32

    # log_softmax pieces, never materializing a full logp matrix.
    x_max = jnp.max(x, axis=-1, keepdims=True)                # (TM, 1)
    shifted = x - x_max                                       # (TM, C)
    lse = jnp.log(jnp.sum(jnp.exp(shifted), axis=-1, keepdims=True))  # (TM, 1)

    # gather shifted[r, target[r]] via a one-hot compare along lanes
    class_ids = jax.lax.broadcasted_iota(jnp.int32, (tm, ncls), 1)
    one_hot = class_ids == tgt                                # (TM, C) bool
    shifted_t = jnp.sum(jnp.where(one_hot, shifted, 0.0), axis=-1, keepdims=True)
    logpt = shifted_t - lse                                   # (TM, 1)
    pt = jnp.exp(logpt)

    g = float(gamma)
    if g == 0.0:
        focal = jnp.ones_like(pt)
    elif g == int(g) and 0 < int(g) <= 4:
        # small integer gamma: repeated VALU multiplies, no pow -> log/exp
        omp = 1.0 - pt
        focal = omp
        for _ in range(int(g) - 1):
            focal = focal * omp
    else:
        focal = jnp.power(1.0 - pt, g)
    fl = -focal * logpt                                       # (TM, 1)

    # Mask rows outside the logical batch (partial last block / clamped
    # duplicate blocks).  jnp.where is a select, so garbage rows that produced
    # Inf/NaN cannot poison the sum (unlike multiply-by-zero).
    row_start = (s * tiles_per_split + i) * tm
    row_ids = row_start + jax.lax.broadcasted_iota(jnp.int32, (tm, 1), 0)
    contrib = jnp.where(row_ids < n_rows, fl * alpha, 0.0)

    # TODO(synk): for extremely long reductions a small vector accumulator
    # reduced once at the end would lower rounding error; with the large TM
    # picked below the tile count stays small so a (1,1) scalar is fine.
    acc_ref[...] += jnp.sum(contrib, keepdims=True)

    @pl.when(i == pl.num_programs(1) - 1)
    def _():
        out_ref[...] = acc_ref[...].reshape(out_ref.shape)


# Double-buffered input working-set budget (lane-padded logits + sideband) and
# the scoped-VMEM limit we request.  48 MiB is below v7x's 64 MiB physical VMEM
# per core and comfortably below v5e/v6e's 128 MiB; 32 MiB of input buffers
# leaves headroom for output/scratch/compiler internals.
_INPUT_VMEM_BUDGET = 32 * 1024 * 1024
_VMEM_LIMIT_BYTES = 48 * 1024 * 1024


def focal_loss(logits, target, weight, gamma=0.0, block_rows=None):
    """logits: (N, C) float (f32 or bf16 -- bf16 halves HBM traffic),
    target: (N,) int, weight: (C,) float -> scalar f32 focal loss
    (matches the PyTorch module's forward: sum(alpha_i * fl_i) / N)."""
    n, c = logits.shape
    itemsize = jnp.dtype(logits.dtype).itemsize

    # alpha = weight[target]: trivial N-length gather in XLA; pack
    # (target, bitcast(alpha)) into one (N, 2) i32 sideband so it costs a
    # single lane-padded VMEM buffer and DMA stream per step.
    alpha = weight.astype(jnp.float32)[target]
    side = jnp.concatenate(
        [target.astype(jnp.int32)[:, None],
         jax.lax.bitcast_convert_type(alpha, jnp.int32)[:, None]], axis=1)

    # --- batch tile size from the *lane-padded* VMEM footprint ---------------
    # logits row: round_up(C, 128) lanes * itemsize; sideband row: 128 i32 lanes.
    bytes_per_row = _round_up(c, 128) * itemsize + 128 * 4
    if block_rows is None:
        tm = (_INPUT_VMEM_BUDGET // 2) // bytes_per_row      # /2: double buffering
    else:
        tm = block_rows
    tm = max(8, (tm // 16) * 16)          # sublane-friendly; 16 covers bf16 packing
    tm = min(tm, _round_up(n, 8))         # never larger than the (aligned) batch

    # --- grid: (split, row-tile); split axis is megacore-parallel on v7x -----
    tiles_total = pl.cdiv(n, tm)
    splits = 2 if tiles_total >= 2 else 1
    tiles_per_split = pl.cdiv(tiles_total, splits)

    def row_imap(s, i):
        # Clamp so a trailing duplicated block stays in bounds; the kernel
        # masks its (out-of-range) logical rows to zero.
        return (jnp.minimum(s * tiles_per_split + i, tiles_total - 1), 0)

    kernel = functools.partial(
        _focal_loss_kernel, gamma=float(gamma), n_rows=n,
        tiles_per_split=tiles_per_split)

    partials = pl.pallas_call(
        kernel,
        out_shape=jax.ShapeDtypeStruct((splits, 1, 1), jnp.float32),
        grid_spec=pltpu.PrefetchScalarGridSpec(
            num_scalar_prefetch=0,
            grid=(splits, tiles_per_split),
            in_specs=[
                pl.BlockSpec((tm, c), row_imap),      # logits tile
                pl.BlockSpec((tm, 2), row_imap),      # merged (target, alpha)
            ],
            out_specs=pl.BlockSpec((1, 1, 1), lambda s, i: (s, 0, 0)),
            scratch_shapes=[pltpu.VMEM((1, 1), jnp.float32)],
        ),
        compiler_params=pltpu.CompilerParams(
            dimension_semantics=("parallel", "arbitrary"),
            vmem_limit_bytes=_VMEM_LIMIT_BYTES,
        ),
    )(logits, side)

    return jnp.sum(partials) * (1.0 / n)


def focal_loss_ref(logits, target, weight, gamma=0.0):
    logp = jax.nn.log_softmax(logits.astype(jnp.float32), axis=1)
    logpt = logp[jnp.arange(logits.shape[0]), target]
    pt = jnp.exp(logpt)
    fl = -((1.0 - pt) ** gamma) * logpt
    alpha = weight.astype(jnp.float32)[target]
    return jnp.dot(fl, alpha) / logits.shape[0]


if __name__ == "__main__":
    key = jax.random.PRNGKey(0)
    k1, k2, k3, k4 = jax.random.split(key, 4)

    # Case 1: small batch, single tile, integer gamma (repeated-multiply path).
    N, C = 8, 16
    logits = jax.random.normal(k1, (N, C), dtype=jnp.float32)
    target = jax.random.randint(k2, (N,), 0, C, dtype=jnp.int32)
    weight = jnp.linspace(0.5, 1.5, C, dtype=jnp.float32)
    loss = jax.block_until_ready(focal_loss(logits, target, weight, gamma=2.0))
    ref = focal_loss_ref(logits, target, weight, gamma=2.0)
    assert jnp.allclose(loss, ref, rtol=1e-5, atol=1e-5), (loss, ref)

    # Case 2: N not a multiple of the tile (in-kernel row mask, no jnp.pad),
    # non-integer gamma (power path), two splits.
    N2 = 13
    logits2 = jax.random.normal(k3, (N2, C), dtype=jnp.float32)
    target2 = jax.random.randint(k4, (N2,), 0, C, dtype=jnp.int32)
    loss2 = jax.block_until_ready(
        focal_loss(logits2, target2, weight, gamma=1.5, block_rows=8))
    ref2 = focal_loss_ref(logits2, target2, weight, gamma=1.5)
    assert jnp.allclose(loss2, ref2, rtol=1e-5, atol=1e-5), (loss2, ref2)

    # Case 3: bf16 logits, odd tile count (exercises the clamped duplicate
    # block on the second split) and a partial last block, gamma = 3.
    N3, C3 = 37, 24
    logits3 = jax.random.normal(jax.random.PRNGKey(5), (N3, C3), dtype=jnp.bfloat16)
    target3 = jax.random.randint(jax.random.PRNGKey(6), (N3,), 0, C3, dtype=jnp.int32)
    weight3 = jnp.linspace(0.25, 2.0, C3, dtype=jnp.float32)
    loss3 = jax.block_until_ready(
        focal_loss(logits3, target3, weight3, gamma=3.0, block_rows=8))
    ref3 = focal_loss_ref(logits3, target3, weight3, gamma=3.0)
    assert jnp.allclose(loss3, ref3, rtol=1e-3, atol=1e-4), (loss3, ref3)

    print("KERNEL_OK")
</pallas_src>

<mosaic_0001>
module attributes {stable_mosaic.version = 11 : i64} {
  func.func @_focal_loss_kernel(%arg0: i32, %arg1: i32, %arg2: memref<8x16xf32, #tpu.memory_space<vmem>>, %arg3: memref<8x2xi32, #tpu.memory_space<vmem>>, %arg4: memref<1x1x1xf32, #tpu.memory_space<vmem>>, %arg5: memref<1x1xf32, #tpu.memory_space<vmem>>) attributes {dimension_semantics = [#tpu.dimension_semantics<parallel>, #tpu.dimension_semantics<arbitrary>], iteration_bounds = array<i64: 1, 1>, scalar_prefetch = 0 : i64, scratch_operands = 1 : i64, tpu.core_type = #tpu.core_type<tc>, window_params = [{transform_indices = @transform_0, window_bounds = array<i64: 8, 16>}, {transform_indices = @transform_1, window_bounds = array<i64: 8, 2>}, {transform_indices = @transform_2, window_bounds = array<i64: 1, 1, 1>}]} {
    %c0_i32 = arith.constant 0 : i32
    %0 = arith.cmpi eq, %arg1, %c0_i32 : i32
    %1 = arith.extui %0 : i1 to i32
    %c0_i32_0 = arith.constant 0 : i32
    %2 = arith.cmpi ne, %1, %c0_i32_0 : i32
    scf.if %2 {
      %cst_19 = arith.constant 0.000000e+00 : f32
      %52 = vector.broadcast %cst_19 : f32 to vector<1x1xf32>
      %c0_20 = arith.constant 0 : index
      %c0_21 = arith.constant 0 : index
      %53 = vector.load %arg5[%c0_20, %c0_21] : memref<1x1xf32, #tpu.memory_space<vmem>>, vector<1x1xf32>
      tpu.vector_store %arg5[%c0_20, %c0_21], %52 {strides = array<i32>} : memref<1x1xf32, #tpu.memory_space<vmem>>, vector<1x1xf32>,
    } else {
    }
    %c0 = arith.constant 0 : index
    %c0_1 = arith.constant 0 : index
    %3 = vector.load %arg2[%c0, %c0_1] : memref<8x16xf32, #tpu.memory_space<vmem>>, vector<8x16xf32>
    %c0_2 = arith.constant 0 : index
    %c0_3 = arith.constant 0 : index
    %4 = vector.load %arg3[%c0_2, %c0_3] : memref<8x2xi32, #tpu.memory_space<vmem>>, vector<8x1xi32>
    %c0_4 = arith.constant 0 : index
    %c1 = arith.constant 1 : index
    %5 = vector.load %arg3[%c0_4, %c1] : memref<8x2xi32, #tpu.memory_space<vmem>>, vector<8x1xi32>
    %6 = tpu.bitcast %5 : vector<8x1xi32> -> vector<8x1xf32>
    %cst = arith.constant dense<0xFF800000> : vector<8xf32>
    %7 = vector.multi_reduction <maximumf>, %3, %cst [1] : vector<8x16xf32> to vector<8xf32>
    %8 = vector.shape_cast %7 : vector<8xf32> to vector<8x1xf32>
    %9 = vector.broadcast %8 : vector<8x1xf32> to vector<8x16xf32>
    %10 = arith.subf %3, %9 : vector<8x16xf32>
    %11 = math.exp %10 : vector<8x16xf32>
    %cst_5 = arith.constant dense<0.000000e+00> : vector<8xf32>
    %12 = vector.multi_reduction <add>, %11, %cst_5 [1] : vector<8x16xf32> to vector<8xf32>
    %13 = vector.shape_cast %12 : vector<8xf32> to vector<8x1xf32>
    %14 = math.log %13 : vector<8x1xf32>
    %15 = tpu.iota {dimensions = array<i32: 1>} : vector<8x16xi32>
    %16 = vector.broadcast %4 : vector<8x1xi32> to vector<8x16xi32>
    %17 = arith.cmpi eq, %15, %16 : vector<8x16xi32>
    %cst_6 = arith.constant 0.000000e+00 : f32
    %18 = vector.broadcast %cst_6 : f32 to vector<8x16xf32>
    %19 = arith.select %17, %10, %18 : vector<8x16xi1>, vector<8x16xf32>
    %cst_7 = arith.constant dense<0.000000e+00> : vector<8xf32>
    %20 = vector.multi_reduction <add>, %19, %cst_7 [1] : vector<8x16xf32> to vector<8xf32>
    %21 = vector.shape_cast %20 : vector<8xf32> to vector<8x1xf32>
    %22 = arith.subf %21, %14 : vector<8x1xf32>
    %23 = math.exp %22 : vector<8x1xf32>
    %cst_8 = arith.constant 1.000000e+00 : f32
    %24 = vector.broadcast %cst_8 : f32 to vector<8x1xf32>
    %25 = arith.subf %24, %23 : vector<8x1xf32>
    %26 = arith.mulf %25, %25 : vector<8x1xf32>
    %cst_9 = arith.constant 0.000000e+00 : f32
    %27 = vector.broadcast %cst_9 : f32 to vector<8x1xf32>
    %28 = arith.subf %27, %26 : vector<8x1xf32>
    %29 = arith.mulf %28, %22 : vector<8x1xf32>
    %c1_i32 = arith.constant 1 : i32
    %30 = arith.muli %arg0, %c1_i32 : i32
    %31 = arith.addi %30, %arg1 : i32
    %c8_i32 = arith.constant 8 : i32
    %32 = arith.muli %31, %c8_i32 : i32
    %33 = tpu.iota {dimensions = array<i32: 0>} : vector<8x1xi32>
    %34 = vector.broadcast %32 : i32 to vector<8x1xi32>
    %35 = arith.addi %34, %33 : vector<8x1xi32>
    %c8_i32_10 = arith.constant 8 : i32
    %36 = vector.broadcast %c8_i32_10 : i32 to vector<8x1xi32>
    %37 = arith.cmpi slt, %35, %36 : vector<8x1xi32>
    %38 = arith.mulf %29, %6 : vector<8x1xf32>
    %cst_11 = arith.constant 0.000000e+00 : f32
    %39 = vector.broadcast %cst_11 : f32 to vector<8x1xf32>
    %40 = arith.select %37, %38, %39 : vector<8x1xi1>, vector<8x1xf32>
    %c0_12 = arith.constant 0 : index
    %c0_13 = arith.constant 0 : index
    %41 = vector.load %arg5[%c0_12, %c0_13] : memref<1x1xf32, #tpu.memory_space<vmem>>, vector<1x1xf32>
    %42 = vector.shape_cast %40 : vector<8x1xf32> to vector<1x8x1xf32>
    %cst_14 = arith.constant dense<0.000000e+00> : vector<1xf32>
    %43 = vector.multi_reduction <add>, %42, %cst_14 [1, 2] : vector<1x8x1xf32> to vector<1xf32>
    %44 = vector.shape_cast %43 : vector<1xf32> to vector<1x1x1xf32>
    %45 = vector.extract %44[0, 0, 0] : f32 from vector<1x1x1xf32>
    %46 = vector.broadcast %45 : f32 to vector<1x1xf32>
    %47 = arith.addf %41, %46 : vector<1x1xf32>
    %c0_15 = arith.constant 0 : index
    %c0_16 = arith.constant 0 : index
    %48 = vector.load %arg5[%c0_15, %c0_16] : memref<1x1xf32, #tpu.memory_space<vmem>>, vector<1x1xf32>
    tpu.vector_store %arg5[%c0_15, %c0_16], %47 {strides = array<i32>} : memref<1x1xf32, #tpu.memory_space<vmem>>, vector<1x1xf32>,
    %c0_i32_17 = arith.constant 0 : i32
    %49 = arith.cmpi eq, %arg1, %c0_i32_17 : i32
    %50 = arith.extui %49 : i1 to i32
    %c0_i32_18 = arith.constant 0 : i32
    %51 = arith.cmpi ne, %50, %c0_i32_18 : i32
    scf.if %51 {
      %c0_19 = arith.constant 0 : index
      %c0_20 = arith.constant 0 : index
      %52 = vector.load %arg5[%c0_19, %c0_20] : memref<1x1xf32, #tpu.memory_space<vmem>>, vector<1x1xf32>
      %53 = vector.shape_cast %52 : vector<1x1xf32> to vector<1x1x1xf32>
      %c0_21 = arith.constant 0 : index
      %c0_22 = arith.constant 0 : index
      %c0_23 = arith.constant 0 : index
      %54 = vector.load %arg4[%c0_21, %c0_22, %c0_23] : memref<1x1x1xf32, #tpu.memory_space<vmem>>, vector<1x1x1xf32>
      tpu.vector_store %arg4[%c0_21, %c0_22, %c0_23], %53 {strides = array<i32>} : memref<1x1x1xf32, #tpu.memory_space<vmem>>, vector<1x1x1xf32>,
    } else {
    }
    return
  }
  func.func @transform_0(%arg0: i32, %arg1: i32) -> (i32, i32) {
    %c1_i32 = arith.constant 1 : i32
    %0 = arith.muli %arg0, %c1_i32 : i32
    %1 = arith.addi %0, %arg1 : i32
    %c0_i32 = arith.constant 0 : i32
    %2 = arith.minsi %1, %c0_i32 : i32
    %c0_i32_0 = arith.constant 0 : i32
    %c0_i32_1 = arith.constant 0 : i32
    return %2, %c0_i32_0 : i32, i32
  }
  func.func @transform_1(%arg0: i32, %arg1: i32) -> (i32, i32) {
    %c1_i32 = arith.constant 1 : i32
    %0 = arith.muli %arg0, %c1_i32 : i32
    %1 = arith.addi %0, %arg1 : i32
    %c0_i32 = arith.constant 0 : i32
    %2 = arith.minsi %1, %c0_i32 : i32
    %c0_i32_0 = arith.constant 0 : i32
    %c0_i32_1 = arith.constant 0 : i32
    return %2, %c0_i32_0 : i32, i32
  }
  func.func @transform_2(%arg0: i32, %arg1: i32) -> (i32, i32, i32) {
    %c0_i32 = arith.constant 0 : i32
    %c0_i32_0 = arith.constant 0 : i32
    %c0_i32_1 = arith.constant 0 : i32
    return %arg0, %c0_i32, %c0_i32_0 : i32, i32, i32
  }
}

</mosaic_0001>

<bundles_post_ra>
// kernel: tpu_custom_call.1
= control target key start
LH: loop header
LB: loop body
LE: loop exit
PB: predicated region body
PF: predicated region fallthrough
CT: control target
= control target key end

     0   :  { %vm75_vm0 = vcmask 130048   ;;  %s244_s0 = inlined_call_operand.vmem [shape: f32[8,16], index: 0, kind: input, shape index: {}]   ;;  %s245_s1 = inlined_call_operand.vmem [shape: s32[8,2], index: 1, kind: input, shape index: {}]   ;;  %s246_s2 = inlined_call_operand.hbm [shape: f32[1,1,1], index: 2, kind: output, shape index: {}]  }
   0x1   :  { %v72_v0 = vld [vmem:[%s244_s0] sm:$0xff] }
   0x2   :  { %7 = vsyncpa [#allocation4], 0  ;;  %v76_v1 = vsel %vm75_vm0, %v72_v0, -inf  ;;  %v201_v2 = vmov 0   ;;  %v73_v3 = vld [vmem:[%s245_s1] sm:$0xff]  ;;  %v87_v7 = vlaneseq  ;;  %s202_s0 = smov 127  }
   0x3   :  { %170 = vset.pattern.permute.xlu0 %v201_v2  ;;  %vm118_vm2 = vcmask 7168   ;;  %vm70_vm3 = vcmask 0   ;;  %v203_v28 = vmov 0.0   ;;  %s204_s13 = smov [#allocation3]  }
   0x4   :  { %77 = vmax.xlane.f32.xlu0 %v76_v1  ;;  %v88_v8 = vand.u32 127, %v87_v7  ;;  %71 = vst.msk [vmem:[#allocation2] sm:$0x1] %vm70_vm3, %v203_v28  ;;  %s144_s14 = sshll.u32 %s204_s13, 4  ;;  %s145_s14 = int_to_ptr.vmem [resolvable:$true] %s144_s14 }
   0x5   :  { %s177_s15 = scalar_lea.vmem %s145_s14, 16  ;;  %s181_s16 = scalar_lea.vmem %s145_s14, 32 }
   0x6   :  { %p178_p0 = scmp.ne.s32.totalorder %s145_s14, %s177_s15  ;;  %p182_p1 = scmp.lt.s32.totalorder %s145_s14, %s145_s14 }
   0x7   :  { %p183_p2 = scmp.lt.s32.totalorder %s181_s16, %s177_s15 }
   0x9   :  { %p184_p3 = por %p183_p2, %p182_p1 }
   0xb   :  { %v113_v36 = vld [vmem:[#allocation2] sm:$0x1]  ;;  %p185_p4 = pnand %p184_p3, %p178_p0 }
  0x1a   :  { %90 = vperm.xlu0 %170, %v73_v3  }
  0x91   :  { %v78_v4 = vpop.xlane.xlu0 %77 }
  0x92   :  { %v79_v5 = vsub.f32 %v72_v0, %v78_v4 }
  0x94   :  { %v80_v6 = vmul.f32 1.442695, %v79_v5 }
  0x96   :  { %171 = vpow2.f32 %v80_v6 }
  0x99   :  { %v91_v9 = vpop.permute.xlu0 %90 }
  0x9a   :  { %vm92_vm1 = vcmp.eq.s32.totalorder %v88_v8, %v91_v9 }
  0x9b   :  { %v93_v12 = vsel %vm92_vm1, %v79_v5, 0.0 }
  0x9c   :  { %v94_v13 = vsel %vm75_vm0, %v93_v12, 0.0 }
  0xa0   :  { %v172_v10 = vpop.eup %171 }
  0xa1   :  { %v82_v11 = vsel %vm75_vm0, %v172_v10, 0.0 }
  0xa2   :  { %83 = vadd.xlane.f32.xlu1 %v82_v11 }
  0xa6   :  { %95 = vadd.xlane.f32.xlu1 %v94_v13 }
 0x12f   :  { %v84_v14 = vpop.xlane.xlu1 %83 }
 0x130   :  { %173 = vlog2.f32 %v84_v14 }
 0x133   :  { %v96_v17 = vpop.xlane.xlu1 %95 }
 0x13a   :  { %v174_v15 = vpop.eup %173 }
 0x13b   :  { %v86_v16 = vmul.f32 0.6931472, %v174_v15 }
 0x13d   :  { %v97_v18 = vsub.f32 %v96_v17, %v86_v16 }
 0x13f   :  { %v98_v19 = vmul.f32 1.442695, %v97_v18 }
 0x141   :  { %175 = vpow2.f32 %v98_v19 }
 0x14b   :  { %v176_v20 = vpop.eup %175 }
 0x14c   :  { %v100_v21 = vsub.f32 1.0, %v176_v20 }
 0x14e   :  { %v101_v22 = vmul.f32 %v100_v21, %v100_v21 }
 0x150   :  { %v102_v23 = vsub.f32 0.0, %v101_v22 }
 0x152   :  { %v103_v24 = vmul.f32 %v102_v23, %v97_v18 }
 0x154   :  { %v111_v25 = vmul.f32 %v103_v24, %v73_v3 }
 0x156   :  { %115 = vrot.lane.b32.xlu1 %v111_v25, %s202_s0 }
 0x1c8   :  { %v116_v26 = vpop.permute.xlu1 %115 }
 0x1c9   :  { %v119_v27 = vsel %vm118_vm2, %v116_v26, 0.0 }
 0x1ca   :  { %120 = vadd.xlane.f32.xlu1 %v119_v27 }
 0x257   :  { %v121_v29 = vpop.xlane.xlu1 %120 }
 0x258   :  { %v122_v30 = vrot.slane %v121_v29, 4 }
 0x25a   :  { %v123_v31 = vadd.f32 %v122_v30, %v121_v29 }
 0x25c   :  { %v124_v32 = vrot.slane %v123_v31, 2 }
 0x25e   :  { %v125_v33 = vadd.f32 %v124_v32, %v123_v31 }
 0x260   :  { %v126_v34 = vrot.slane %v125_v33, 1 }
 0x262   :  { %v127_v35 = vadd.f32 %v126_v34, %v125_v33 }
 0x264   :  { %164 = vpush %v127_v35 }
 0x295   :  { %s165_s1 = spop %164 }
 0x296   :  { %v129_v37 = vstv %s165_s1 }
 0x297   :  { %v130_v38 = vadd.f32 %v129_v37, %v113_v36 }
 0x299   :  { %132 = vst.msk [vmem:[#allocation2] sm:$0x1] %vm70_vm3, %v130_v38 }
 0x2a0   :  { %v136_v39 = vld [vmem:[#allocation2] sm:$0x1] }
 0x2a1   :  { %137 = vst.msk [vmem:[#allocation3] sm:$0x1] %vm70_vm3, %v136_v39 }
 0x2a2   :  { %188 = shalt.err (!%p185_p4)
}
 0x2a3   :  { %s189_s19 = scalar_lea.hbm %s246_s2, 16 }
 0x2a4   :  { %p190_p5 = scmp.ne.s32.totalorder %s246_s2, %s189_s19  ;;  %p193_p6 = scmp.lt.u32.totalorder %s189_s19, %s246_s2 }
 0x2a6   :  { %p195_p7 = pnand %p193_p6, %p190_p5 }
 0x2a8   :  { %198 = shalt.err (!%p195_p7)
}
 0x2a9   :  { %147 = dma.vmem_to_hbm [thread:$0]  %s145_s14, 16, %s246_s2, [#allocation4]  }
 0x2aa   :  { %199 = dma.done.wait [#allocation4], 16  }
 0x2ab   :  { %200 = vsyncadd [#allocation4], 4294967280 }
 0x2ac   :  { %151 = vsyncpa [#allocation4], 1 }

</bundles_post_ra>
